<compile_context>
chip_gen: v7x
topology: tpu7x:2x2x1
jax: 0.10.0
libtpu: 0.0.40
codegen_flags: <defaults>
</compile_context>

<pallas_src>
import functools

import jax
import jax.numpy as jnp
from jax.experimental import pallas as pl
from jax.experimental.pallas import tpu as pltpu

HIDDEN = 32            # fc1 output features
OUT = 1                # fc2 output features
LANE = 128
VMEM_BUDGET_BYTES = 12 * 1024 * 1024   # block-buffer budget (limit set to 32 MiB)
VMEM_LIMIT_BYTES = 32 * 1024 * 1024    # >= v5e default 16 MiB, == v6e/v7x default


def _round_up(n, m):
    return ((n + m - 1) // m) * m


def _cdiv(a, b):
    return (a + b - 1) // b


def policy_kernel(x_ref, w1_ref, b1_ref, w2_ref, b2_ref, o_ref):
    # x_ref : (TB, D)       f32  batch tile (streamed per grid step)
    # w1_ref: (D, 32)       f32  VMEM-resident (constant index_map)
    # b1_ref: (1, 32)       f32  VMEM-resident
    # w2_ref: (32, 1)       f32  VMEM-resident
    # b2_ref: (1, 1)        f32  SMEM scalar
    # o_ref : (TB, 1)       f32  output tile
    x = x_ref[...]

    # fc1 + ReLU: native (TB,D)x(D,32) MXU matmul, f32 accumulate, VPU max.
    h = jnp.dot(x, w1_ref[...], preferred_element_type=jnp.float32) + b1_ref[...]
    h = jnp.maximum(h, 0.0)

    # fc2: native (TB,32)x(32,1) MXU matmul with a tiny stationary operand.
    # No transpose of the large h tile is ever required.
    z = jnp.dot(h, w2_ref[...], preferred_element_type=jnp.float32) + b2_ref[0, 0]

    # Sigmoid: exp on the EUP; approx reciprocal also on the EUP (vrcp),
    # ~1e-3 relative error vs. an exact divide.
    o_ref[...] = pl.reciprocal(1.0 + jnp.exp(-z), approx=True)


def _pick_tile(B, D, tile_rows=None):
    """Rows per grid step: multiple of 128, sized from a VMEM byte budget."""
    if tile_rows is not None:
        return max(LANE, _round_up(int(tile_rows), LANE))

    lanes_x = _round_up(D, LANE)      # x tile lane-pads D -> 128 in VMEM
    # Per-row VMEM bytes (f32):
    #   2 double-buffered x tiles + ~2 live (TB,32)->(TB,128) intermediates
    #   + ~2 live (TB,1)->(TB,128) temporaries + 2 double-buffered output tiles
    bytes_per_row = 4 * (2 * lanes_x + 2 * LANE + 4 * LANE)
    tb = (VMEM_BUDGET_BYTES // bytes_per_row) // LANE * LANE
    tb = max(LANE, tb)

    if B <= tb:
        # Single tile: round up to 128 rows (aligned boundary block).
        return _round_up(B, LANE)

    # Multi-tile: keep >= 4 tiles (when they stay reasonably large) so v7x's
    # two TensorCores both get work from the "parallel" grid axis.
    tb_balanced = _round_up(_cdiv(B, 4), LANE)
    return max(512, min(tb, tb_balanced))


def policy_forward(x, w1, b1, w2, b2, *, tile_rows=None):
    """x: (B, D) f32; w1: (D, 32); b1: (32,); w2: (32, 1); b2: (1,). Returns (B, 1)."""
    B, D = x.shape
    x = x.astype(jnp.float32)

    tb = _pick_tile(B, D, tile_rows)
    num_tiles = _cdiv(B, tb)

    w1_f = w1.astype(jnp.float32)
    b1_2d = b1.reshape(1, HIDDEN).astype(jnp.float32)
    w2_f = w2.reshape(HIDDEN, OUT).astype(jnp.float32)
    b2_2d = b2.reshape(1, OUT).astype(jnp.float32)

    out = pl.pallas_call(
        policy_kernel,
        out_shape=jax.ShapeDtypeStruct((B, OUT), jnp.float32),
        grid_spec=pltpu.PrefetchScalarGridSpec(
            num_scalar_prefetch=0,
            grid=(num_tiles,),
            in_specs=[
                pl.BlockSpec((tb, D), lambda i: (i, 0)),            # x: streamed per tile
                pl.BlockSpec((D, HIDDEN), lambda i: (0, 0)),        # w1: resident
                pl.BlockSpec((1, HIDDEN), lambda i: (0, 0)),        # b1: resident
                pl.BlockSpec((HIDDEN, OUT), lambda i: (0, 0)),      # w2: resident
                pl.BlockSpec(memory_space=pltpu.MemorySpace.SMEM),  # b2: SMEM scalar
            ],
            out_specs=pl.BlockSpec((tb, OUT), lambda i: (i, 0)),
        ),
        compiler_params=pltpu.CompilerParams(
            dimension_semantics=("parallel",),       # v7x: shard tiles over both TCs
            vmem_limit_bytes=VMEM_LIMIT_BYTES,       # keep big tiles legal on v5e
        ),
    )(x, w1_f, b1_2d, w2_f, b2_2d)

    return out


def init_params(key, input_size):
    """Deterministic init mirroring nn.Linear's uniform(-1/sqrt(fan_in), 1/sqrt(fan_in))."""
    k1, k2, k3, k4 = jax.random.split(key, 4)
    bound1 = 1.0 / jnp.sqrt(input_size)
    bound2 = 1.0 / jnp.sqrt(HIDDEN)
    # Stored as (in_features, out_features) — transposed vs. PyTorch's (out, in).
    w1 = jax.random.uniform(k1, (input_size, HIDDEN), jnp.float32, -bound1, bound1)
    b1 = jax.random.uniform(k2, (HIDDEN,), jnp.float32, -bound1, bound1)
    w2 = jax.random.uniform(k3, (HIDDEN, OUT), jnp.float32, -bound2, bound2)
    b2 = jax.random.uniform(k4, (OUT,), jnp.float32, -bound2, bound2)
    return w1, b1, w2, b2


def _reference(x, w1, b1, w2, b2):
    return jax.nn.sigmoid(jnp.maximum(x @ w1 + b1, 0.0) @ w2 + b2)


if __name__ == "__main__":
    key = jax.random.PRNGKey(0)
    k_x, k_x2, k_p = jax.random.split(key, 3)

    batch, input_size = 8, 16
    x = jax.random.normal(k_x, (batch, input_size), jnp.float32)
    w1, b1, w2, b2 = init_params(k_p, input_size)

    fwd = jax.jit(policy_forward, static_argnames=("tile_rows",))

    # Small batch: single 128-row boundary tile.
    out = jax.block_until_ready(fwd(x, w1, b1, w2, b2))
    ref = _reference(x, w1, b1, w2, b2)
    assert out.shape == (batch, OUT)
    # approx=True sigmoid reciprocal -> ~1e-3 relative tolerance.
    assert jnp.allclose(out, ref, atol=5e-3), "mismatch vs reference (small batch)"

    # Larger batch with a forced small tile: exercises the multi-tile grid plus
    # the ragged (boundary-block) last tile with NO wrapper-side padding.
    batch2 = 1040
    x2 = jax.random.normal(k_x2, (batch2, input_size), jnp.float32)
    out2 = jax.block_until_ready(fwd(x2, w1, b1, w2, b2, tile_rows=256))
    ref2 = _reference(x2, w1, b1, w2, b2)
    assert out2.shape == (batch2, OUT)
    assert jnp.allclose(out2, ref2, atol=5e-3), "mismatch vs reference (tiled batch)"

    # Default (VMEM-budgeted) tile path on the same larger batch.
    out3 = jax.block_until_ready(fwd(x2, w1, b1, w2, b2))
    assert out3.shape == (batch2, OUT)
    assert jnp.allclose(out3, ref2, atol=5e-3), "mismatch vs reference (budgeted tile)"

    print("KERNEL_OK")
</pallas_src>

<mosaic_0001>
module attributes {stable_mosaic.version = 11 : i64} {
  func.func @policy_kernel(%arg0: i32, %arg1: memref<128x16xf32, #tpu.memory_space<vmem>>, %arg2: memref<16x32xf32, #tpu.memory_space<vmem>>, %arg3: memref<1x32xf32, #tpu.memory_space<vmem>>, %arg4: memref<32x1xf32, #tpu.memory_space<vmem>>, %arg5: memref<1x1xf32, #tpu.memory_space<smem>>, %arg6: memref<128x1xf32, #tpu.memory_space<vmem>>) attributes {dimension_semantics = [#tpu.dimension_semantics<parallel>], iteration_bounds = array<i64: 1>, scalar_prefetch = 0 : i64, scratch_operands = 0 : i64, tpu.core_type = #tpu.core_type<tc>, window_params = [{transform_indices = @transform_0, window_bounds = array<i64: 128, 16>}, {pipeline_mode = #tpu.pipeline_mode<synchronous>, transform_indices = @transform_1, window_bounds = array<i64: 16, 32>}, {pipeline_mode = #tpu.pipeline_mode<synchronous>, transform_indices = @transform_2, window_bounds = array<i64: 1, 32>}, {pipeline_mode = #tpu.pipeline_mode<synchronous>, transform_indices = @transform_3, window_bounds = array<i64: 32, 1>}, {transform_indices = @transform_4, window_bounds = array<i64: 1, 1>}, {transform_indices = @transform_5, window_bounds = array<i64: 128, 1>}]} {
    %c0 = arith.constant 0 : index
    %c0_0 = arith.constant 0 : index
    %0 = vector.load %arg1[%c0, %c0_0] : memref<128x16xf32, #tpu.memory_space<vmem>>, vector<128x16xf32>
    %c0_1 = arith.constant 0 : index
    %c0_2 = arith.constant 0 : index
    %1 = vector.load %arg2[%c0_1, %c0_2] : memref<16x32xf32, #tpu.memory_space<vmem>>, vector<16x32xf32>
    %cst = arith.constant dense<0.000000e+00> : vector<128x32xf32>
    %2 = tpu.matmul %0, %1, %cst {dimension_numbers = #tpu.dot_dimension_numbers<[1], [0], [0], [1], [0, 0, 1, 1], [], []>} : vector<128x16xf32>, vector<16x32xf32>, vector<128x32xf32> -> vector<128x32xf32>
    %c0_3 = arith.constant 0 : index
    %c0_4 = arith.constant 0 : index
    %3 = vector.load %arg3[%c0_3, %c0_4] : memref<1x32xf32, #tpu.memory_space<vmem>>, vector<1x32xf32>
    %4 = vector.broadcast %3 : vector<1x32xf32> to vector<128x32xf32>
    %5 = arith.addf %2, %4 : vector<128x32xf32>
    %cst_5 = arith.constant 0.000000e+00 : f32
    %6 = vector.broadcast %cst_5 : f32 to vector<128x32xf32>
    %7 = arith.maximumf %5, %6 : vector<128x32xf32>
    %c0_6 = arith.constant 0 : index
    %c0_7 = arith.constant 0 : index
    %8 = vector.load %arg4[%c0_6, %c0_7] : memref<32x1xf32, #tpu.memory_space<vmem>>, vector<32x1xf32>
    %cst_8 = arith.constant dense<0.000000e+00> : vector<128x1xf32>
    %9 = tpu.matmul %7, %8, %cst_8 {dimension_numbers = #tpu.dot_dimension_numbers<[1], [0], [0], [1], [0, 0, 1, 1], [], []>} : vector<128x32xf32>, vector<32x1xf32>, vector<128x1xf32> -> vector<128x1xf32>
    %c0_9 = arith.constant 0 : index
    %c0_10 = arith.constant 0 : index
    %10 = memref.load %arg5[%c0_9, %c0_10] : memref<1x1xf32, #tpu.memory_space<smem>>
    %11 = vector.broadcast %10 : f32 to vector<128x1xf32>
    %12 = arith.addf %9, %11 : vector<128x1xf32>
    %cst_11 = arith.constant 0.000000e+00 : f32
    %13 = vector.broadcast %cst_11 : f32 to vector<128x1xf32>
    %14 = arith.subf %13, %12 : vector<128x1xf32>
    %15 = math.exp %14 : vector<128x1xf32>
    %cst_12 = arith.constant 1.000000e+00 : f32
    %16 = vector.broadcast %cst_12 : f32 to vector<128x1xf32>
    %17 = arith.addf %16, %15 : vector<128x1xf32>
    %18 = tpu.reciprocal %17 {approx = true} : vector<128x1xf32> -> vector<128x1xf32>
    %c0_13 = arith.constant 0 : index
    %c0_14 = arith.constant 0 : index
    %19 = vector.load %arg6[%c0_13, %c0_14] : memref<128x1xf32, #tpu.memory_space<vmem>>, vector<128x1xf32>
    tpu.vector_store %arg6[%c0_13, %c0_14], %18 {strides = array<i32>} : memref<128x1xf32, #tpu.memory_space<vmem>>, vector<128x1xf32>,
    return
  }
  func.func @transform_0(%arg0: i32) -> (i32, i32) {
    %c0_i32 = arith.constant 0 : i32
    %c0_i32_0 = arith.constant 0 : i32
    return %arg0, %c0_i32 : i32, i32
  }
  func.func @transform_1(%arg0: i32) -> (i32, i32) {
    %c0_i32 = arith.constant 0 : i32
    %c0_i32_0 = arith.constant 0 : i32
    %c0_i32_1 = arith.constant 0 : i32
    return %c0_i32, %c0_i32_0 : i32, i32
  }
  func.func @transform_2(%arg0: i32) -> (i32, i32) {
    %c0_i32 = arith.constant 0 : i32
    %c0_i32_0 = arith.constant 0 : i32
    %c0_i32_1 = arith.constant 0 : i32
    return %c0_i32, %c0_i32_0 : i32, i32
  }
  func.func @transform_3(%arg0: i32) -> (i32, i32) {
    %c0_i32 = arith.constant 0 : i32
    %c0_i32_0 = arith.constant 0 : i32
    %c0_i32_1 = arith.constant 0 : i32
    return %c0_i32, %c0_i32_0 : i32, i32
  }
  func.func @transform_4(%arg0: i32) -> (i32, i32) {
    %c0_i32 = arith.constant 0 : i32
    %c0_i32_0 = arith.constant 0 : i32
    %c0_i32_1 = arith.constant 0 : i32
    return %c0_i32, %c0_i32_0 : i32, i32
  }
  func.func @transform_5(%arg0: i32) -> (i32, i32) {
    %c0_i32 = arith.constant 0 : i32
    %c0_i32_0 = arith.constant 0 : i32
    return %arg0, %c0_i32 : i32, i32
  }
}

</mosaic_0001>

<bundles_post_ra>
// kernel: policy_forward.1
= control target key start
LH: loop header
LB: loop body
LE: loop exit
PB: predicated region body
PF: predicated region fallthrough
CT: control target
= control target key end

     0   :  { %vm46_vm0 = vcmask 130048   ;;  %vm262_vm1 = vcmask 261120   ;;  %vm536_vm2 = vcmask 7168   ;;  %s956_s0 = inlined_call_operand.vmem [shape: f32[8,16], index: 0, kind: input, shape index: {}]   ;;  %s957_s1 = inlined_call_operand.vmem [shape: f32[16,32], index: 1, kind: input, shape index: {}]   ;;  %s958_s2 = inlined_call_operand.vmem [shape: f32[1,32], index: 2, kind: input, shape index: {}]   ;;  %s959_s3 = inlined_call_operand.vmem [shape: f32[32,1], index: 3, kind: input, shape index: {}]   ;;  %s960_s4 = inlined_call_operand.<no memory space> [shape: f32[1,1], index: 4, kind: input, shape index: {}]   ;;  %s961_s5 = inlined_call_operand.vmem [shape: f32[8,1], index: 5, kind: output, shape index: {}]  }
   0x1   :  { %v37_v0 = vld [vmem:[%s957_s1] sm:$0xff]  ;;  %v38_v1 = vld [vmem:[%s957_s1 + $0x8] sm:$0xff]  ;;  %v23_v5 = vld [vmem:[%s956_s0 + $0x10] sm:$0xff] }
   0x2   :  { %v21_v2 = vld [vmem:[%s956_s0] sm:$0xff]  ;;  %v724_v3 = vpack.c.bf16 %v38_v1, %v37_v0  ;;  %v22_v4 = vld [vmem:[%s956_s0 + $0x8] sm:$0xff]  ;;  %v24_v9 = vld [vmem:[%s956_s0 + $0x18] sm:$0xff] }
   0x3   :  { %668 = vmatprep.mubr.msk.f32.mxu0 %vm46_vm0, %v21_v2  ;;  %v256_v6 = vld [vmem:[%s959_s3] sm:$0xff]  ;;  %v257_v7 = vld [vmem:[%s959_s3 + $0x8] sm:$0xff]  ;;  %v27_v12 = vld [vmem:[%s956_s0 + $0x30] sm:$0xff] }
   0x4   :  { %725 = vmatprep.subr.bf16.mxu0 %v724_v3  ;;  %v728_v8 = vpack.c.bf16 %v257_v7, %v256_v6  ;;  %v25_v10 = vld [vmem:[%s956_s0 + $0x20] sm:$0xff]  ;;  %v26_v11 = vld [vmem:[%s956_s0 + $0x28] sm:$0xff]  ;;  %v28_v13 = vld [vmem:[%s956_s0 + $0x38] sm:$0xff] }
   0x5   :  { %727 = vmatpush3.bf16.msra.mxu0 %v724_v3  ;;  %v29_v14 = vld [vmem:[%s956_s0 + $0x40] sm:$0xff]  ;;  %v30_v15 = vld [vmem:[%s956_s0 + $0x48] sm:$0xff]  ;;  %v31_v16 = vld [vmem:[%s956_s0 + $0x50] sm:$0xff] }
   0x6   :  { %729 = vmatprep.subr.bf16.mxu1 %v728_v8  ;;  %v32_v17 = vld [vmem:[%s956_s0 + $0x58] sm:$0xff]  ;;  %v33_v18 = vld [vmem:[%s956_s0 + $0x60] sm:$0xff]  ;;  %v34_v19 = vld [vmem:[%s956_s0 + $0x68] sm:$0xff] }
   0x7   :  { %731 = vmatpush3.bf16.msra.mxu1 %v728_v8  ;;  %v35_v20 = vld [vmem:[%s956_s0 + $0x70] sm:$0xff]  ;;  %v36_v21 = vld [vmem:[%s956_s0 + $0x78] sm:$0xff]  ;;  %v593_v25 = vld [vmem:[%s958_s2] ss:$0 sm:$0xff] }
   0x8   :  { %669 = vmatmul.mubr.msk.f32.vlgmr.msra.gmra.mrb[0].mxu0 %vm46_vm0, %v22_v4  ;;  %v258_v22 = vld [vmem:[%s959_s3 + $0x10] sm:$0xff]  ;;  %v259_v23 = vld [vmem:[%s959_s3 + $0x18] sm:$0xff] }
   0x9   :  { %671 = vmatprep.mubr.msk.f32.mxu0 %vm46_vm0, %v23_v5  ;;  %v732_v24 = vpack.c.bf16 %v259_v23, %v258_v22 }
   0xb   :  { %733 = vmatprep.subr.bf16.mxu1 %v732_v24 }
   0xc   :  { %672 = vmatmul.mubr.msk.f32.gmra.mrb[2].mxu0 %vm46_vm0, %v24_v9  ;;  %735 = vmatpush3.bf16.msra.mxu1 %v732_v24 }
   0xd   :  { %674 = vmatprep.mubr.msk.f32.mxu0 %vm46_vm0, %v25_v10  ;;  %v934_v10 = vstv %s960_s4 }
  0x10   :  { %675 = vmatmul.mubr.msk.f32.gmra.mrb[4].mxu0 %vm46_vm0, %v26_v11 }
  0x11   :  { %677 = vmatprep.mubr.msk.f32.mxu0 %vm46_vm0, %v27_v12 }
  0x14   :  { %678 = vmatmul.mubr.msk.f32.gmra.mrb[6].mxu0 %vm46_vm0, %v28_v13 }
  0x15   :  { %680 = vmatprep.mubr.msk.f32.mxu0 %vm46_vm0, %v29_v14 }
  0x18   :  { %681 = vmatmul.mubr.msk.f32.gmra.mrb[8].mxu0 %vm46_vm0, %v30_v15 }
  0x19   :  { %683 = vmatprep.mubr.msk.f32.mxu0 %vm46_vm0, %v31_v16 }
  0x1c   :  { %684 = vmatmul.mubr.msk.f32.gmra.mrb[10].mxu0 %vm46_vm0, %v32_v17 }
  0x1d   :  { %686 = vmatprep.mubr.msk.f32.mxu0 %vm46_vm0, %v33_v18 }
  0x20   :  { %687 = vmatmul.mubr.msk.f32.gmra.mrb[12].mxu0 %vm46_vm0, %v34_v19 }
  0x21   :  { %689 = vmatprep.mubr.msk.f32.mxu0 %vm46_vm0, %v35_v20 }
  0x24   :  { %690 = vmatmul.mubr.msk.f32.gmra.mrb[14].mxu0 %vm46_vm0, %v36_v21 }
  0xdb   :  { %v670_v26 = vpop.f32.mrb[0].mxu0 }
  0xdc   :  { %v167_v27 = vadd.f32 %v670_v26, %v593_v25  ;;  %v161_v28 = vpop.f32.mrb[1].mxu0 }
  0xdd   :  { %v162_v29 = vadd.f32 %v593_v25, %v161_v28 }
  0xde   :  { %v241_v32 = vmax.f32 %v167_v27, 0.0 }
  0xdf   :  { %v240_v30 = vmax.f32 %v162_v29, 0.0  ;;  %v673_v31 = vpop.f32.mrb[2].mxu0 }
  0xe0   :  { %v177_v33 = vadd.f32 %v673_v31, %v593_v25  ;;  %v171_v34 = vpop.f32.mrb[3].mxu0 }
  0xe1   :  { %v172_v35 = vadd.f32 %v593_v25, %v171_v34  ;;  %700 = vmatprep.mubr.msk.f32.mxu1 %vm262_vm1, %v240_v30 }
  0xe2   :  { %701 = vmatmul.mubr.msk.f32.vlgmr.msra.gmra.mrb[0].mxu1 %vm262_vm1, %v241_v32  ;;  %v243_v38 = vmax.f32 %v177_v33, 0.0 }
  0xe3   :  { %v242_v36 = vmax.f32 %v172_v35, 0.0  ;;  %v676_v37 = vpop.f32.mrb[4].mxu0 }
  0xe4   :  { %v187_v39 = vadd.f32 %v676_v37, %v593_v25  ;;  %v181_v40 = vpop.f32.mrb[5].mxu0 }
  0xe5   :  { %v182_v41 = vadd.f32 %v593_v25, %v181_v40  ;;  %703 = vmatprep.mubr.msk.f32.mxu1 %vm262_vm1, %v242_v36 }
  0xe6   :  { %704 = vmatmul.mubr.msk.f32.gmra.mrb[2].mxu1 %vm262_vm1, %v243_v38  ;;  %v245_v44 = vmax.f32 %v187_v39, 0.0 }
  0xe7   :  { %v244_v42 = vmax.f32 %v182_v41, 0.0  ;;  %v679_v43 = vpop.f32.mrb[6].mxu0 }
  0xe8   :  { %v197_v45 = vadd.f32 %v679_v43, %v593_v25  ;;  %v191_v46 = vpop.f32.mrb[7].mxu0 }
  0xe9   :  { %v192_v47 = vadd.f32 %v593_v25, %v191_v46  ;;  %706 = vmatprep.mubr.msk.f32.mxu1 %vm262_vm1, %v244_v42 }
  0xea   :  { %707 = vmatmul.mubr.msk.f32.gmra.mrb[4].mxu1 %vm262_vm1, %v245_v44  ;;  %v247_v50 = vmax.f32 %v197_v45, 0.0 }
  0xeb   :  { %v246_v48 = vmax.f32 %v192_v47, 0.0  ;;  %v682_v49 = vpop.f32.mrb[8].mxu0 }
  0xec   :  { %v207_v51 = vadd.f32 %v682_v49, %v593_v25  ;;  %v201_v52 = vpop.f32.mrb[9].mxu0 }
  0xed   :  { %v202_v53 = vadd.f32 %v593_v25, %v201_v52  ;;  %709 = vmatprep.mubr.msk.f32.mxu1 %vm262_vm1, %v246_v48 }
  0xee   :  { %710 = vmatmul.mubr.msk.f32.gmra.mrb[6].mxu1 %vm262_vm1, %v247_v50  ;;  %v249_v56 = vmax.f32 %v207_v51, 0.0 }
  0xef   :  { %v248_v54 = vmax.f32 %v202_v53, 0.0  ;;  %v685_v55 = vpop.f32.mrb[10].mxu0 }
  0xf0   :  { %v217_v57 = vadd.f32 %v685_v55, %v593_v25  ;;  %v211_v58 = vpop.f32.mrb[11].mxu0 }
  0xf1   :  { %v212_v59 = vadd.f32 %v593_v25, %v211_v58  ;;  %712 = vmatprep.mubr.msk.f32.mxu1 %vm262_vm1, %v248_v54 }
  0xf2   :  { %713 = vmatmul.mubr.msk.f32.gmra.mrb[8].mxu1 %vm262_vm1, %v249_v56  ;;  %v251_v62 = vmax.f32 %v217_v57, 0.0 }
  0xf3   :  { %v250_v60 = vmax.f32 %v212_v59, 0.0  ;;  %v688_v61 = vpop.f32.mrb[12].mxu0 }
  0xf4   :  { %v227_v63 = vadd.f32 %v688_v61, %v593_v25  ;;  %v221_v0 = vpop.f32.mrb[13].mxu0 }
  0xf5   :  { %v222_v1 = vadd.f32 %v593_v25, %v221_v0  ;;  %715 = vmatprep.mubr.msk.f32.mxu1 %vm262_vm1, %v250_v60 }
  0xf6   :  { %716 = vmatmul.mubr.msk.f32.gmra.mrb[10].mxu1 %vm262_vm1, %v251_v62  ;;  %v253_v4 = vmax.f32 %v227_v63, 0.0 }
  0xf7   :  { %v252_v2 = vmax.f32 %v222_v1, 0.0  ;;  %v691_v3 = vpop.f32.mrb[14].mxu0 }
  0xf8   :  { %v237_v5 = vadd.f32 %v691_v3, %v593_v25  ;;  %v231_v6 = vpop.f32.mrb[15].mxu0 }
  0xf9   :  { %v232_v7 = vadd.f32 %v593_v25, %v231_v6  ;;  %718 = vmatprep.mubr.msk.f32.mxu1 %vm262_vm1, %v252_v2 }
  0xfa   :  { %719 = vmatmul.mubr.msk.f32.gmra.mrb[12].mxu1 %vm262_vm1, %v253_v4  ;;  %v255_v9 = vmax.f32 %v237_v5, 0.0 }
  0xfb   :  { %v254_v8 = vmax.f32 %v232_v7, 0.0 }
  0xfd   :  { %721 = vmatprep.mubr.msk.f32.mxu1 %vm262_vm1, %v254_v8 }
  0xfe   :  { %722 = vmatmul.mubr.msk.f32.gmra.mrb[14].mxu1 %vm262_vm1, %v255_v9 }
 0x1b5   :  { %v702_v11 = vpop.f32.mrb[0].mxu1 }
 0x1b6   :  { %v383_v12 = vadd.f32 %v702_v11, %v934_v10  ;;  %v377_v13 = vpop.f32.mrb[1].mxu1 }
 0x1b7   :  { %v378_v14 = vadd.f32 %v377_v13, %v934_v10 }
 0x1b8   :  { %v457_v15 = vsub.f32 0.0, %v383_v12 }
 0x1b9   :  { %v456_v16 = vsub.f32 0.0, %v378_v14  ;;  %v705_v17 = vpop.f32.mrb[2].mxu1 }
 0x1ba   :  { %v474_v18 = vmul.f32 1.442695, %v457_v15  ;;  %v393_v19 = vadd.f32 %v705_v17, %v934_v10  ;;  %v387_v20 = vpop.f32.mrb[3].mxu1 }
 0x1bb   :  { %v472_v21 = vmul.f32 1.442695, %v456_v16  ;;  %v388_v22 = vadd.f32 %v387_v20, %v934_v10 }
 0x1bc   :  { %736 = vpow2.f32 %v474_v18  ;;  %v459_v23 = vsub.f32 0.0, %v393_v19 }
 0x1bd   :  { %738 = vpow2.f32 %v472_v21  ;;  %v458_v24 = vsub.f32 0.0, %v388_v22  ;;  %v708_v25 = vpop.f32.mrb[4].mxu1 }
 0x1be   :  { %v478_v26 = vmul.f32 1.442695, %v459_v23  ;;  %v403_v27 = vadd.f32 %v708_v25, %v934_v10  ;;  %v397_v28 = vpop.f32.mrb[5].mxu1 }
 0x1bf   :  { %v476_v29 = vmul.f32 1.442695, %v458_v24  ;;  %v398_v30 = vadd.f32 %v397_v28, %v934_v10 }
 0x1c0   :  { %740 = vpow2.f32 %v478_v26  ;;  %v461_v31 = vsub.f32 0.0, %v403_v27 }
 0x1c1   :  { %742 = vpow2.f32 %v476_v29  ;;  %v460_v32 = vsub.f32 0.0, %v398_v30  ;;  %v711_v33 = vpop.f32.mrb[6].mxu1 }
 0x1c2   :  { %v482_v34 = vmul.f32 1.442695, %v461_v31  ;;  %v413_v35 = vadd.f32 %v711_v33, %v934_v10  ;;  %v407_v36 = vpop.f32.mrb[7].mxu1 }
 0x1c3   :  { %v480_v37 = vmul.f32 1.442695, %v460_v32  ;;  %v408_v38 = vadd.f32 %v407_v36, %v934_v10 }
 0x1c4   :  { %744 = vpow2.f32 %v482_v34  ;;  %v463_v39 = vsub.f32 0.0, %v413_v35 }
 0x1c5   :  { %746 = vpow2.f32 %v480_v37  ;;  %v462_v40 = vsub.f32 0.0, %v408_v38  ;;  %v714_v41 = vpop.f32.mrb[8].mxu1 }
 0x1c6   :  { %v737_v42 = vpop.eup %736  ;;  %v486_v43 = vmul.f32 1.442695, %v463_v39  ;;  %v423_v44 = vadd.f32 %v714_v41, %v934_v10  ;;  %v417_v45 = vpop.f32.mrb[9].mxu1 }
 0x1c7   :  { %v739_v46 = vpop.eup %738  ;;  %v505_v47 = vadd.f32 1.0, %v737_v42  ;;  %v484_v48 = vmul.f32 1.442695, %v462_v40  ;;  %v418_v49 = vadd.f32 %v417_v45, %v934_v10 }
 0x1c8   :  { %v504_v50 = vadd.f32 1.0, %v739_v46  ;;  %748 = vpow2.f32 %v486_v43  ;;  %v465_v51 = vsub.f32 0.0, %v423_v44 }
 0x1c9   :  { %750 = vrcp.f32 %v505_v47  ;;  %v464_v52 = vsub.f32 0.0, %v418_v49  ;;  %v717_v53 = vpop.f32.mrb[10].mxu1 }
 0x1ca   :  { %v741_v54 = vpop.eup %740  ;;  %752 = vrcp.f32 %v504_v50  ;;  %v490_v55 = vmul.f32 1.442695, %v465_v51  ;;  %v433_v56 = vadd.f32 %v717_v53, %v934_v10  ;;  %v427_v57 = vpop.f32.mrb[11].mxu1 }
 0x1cb   :  { %v743_v58 = vpop.eup %742  ;;  %v507_v59 = vadd.f32 1.0, %v741_v54  ;;  %754 = vpow2.f32 %v484_v48  ;;  %v488_v60 = vmul.f32 1.442695, %v464_v52  ;;  %v428_v61 = vadd.f32 %v427_v57, %v934_v10 }
 0x1cc   :  { %v506_v62 = vadd.f32 1.0, %v743_v58  ;;  %756 = vpow2.f32 %v490_v55  ;;  %v467_v63 = vsub.f32 0.0, %v433_v56 }
 0x1cd   :  { %758 = vrcp.f32 %v507_v59  ;;  %v466_v0 = vsub.f32 0.0, %v428_v61  ;;  %v720_v1 = vpop.f32.mrb[12].mxu1 }
 0x1ce   :  { %v745_v2 = vpop.eup %744  ;;  %760 = vrcp.f32 %v506_v62  ;;  %v494_v3 = vmul.f32 1.442695, %v467_v63  ;;  %v443_v4 = vadd.f32 %v720_v1, %v934_v10  ;;  %v437_v5 = vpop.f32.mrb[13].mxu1 }
 0x1cf   :  { %v747_v6 = vpop.eup %746  ;;  %v509_v7 = vadd.f32 1.0, %v745_v2  ;;  %762 = vpow2.f32 %v488_v60  ;;  %v492_v8 = vmul.f32 1.442695, %v466_v0  ;;  %v438_v9 = vadd.f32 %v437_v5, %v934_v10 }
 0x1d0   :  { %v508_v11 = vadd.f32 1.0, %v747_v6  ;;  %764 = vpow2.f32 %v494_v3  ;;  %v469_v12 = vsub.f32 0.0, %v443_v4 }
 0x1d1   :  { %766 = vrcp.f32 %v509_v7  ;;  %v468_v13 = vsub.f32 0.0, %v438_v9  ;;  %v723_v14 = vpop.f32.mrb[14].mxu1 }
 0x1d2   :  { %v749_v15 = vpop.eup %748  ;;  %768 = vrcp.f32 %v508_v11  ;;  %v498_v16 = vmul.f32 1.442695, %v469_v12  ;;  %v453_v17 = vadd.f32 %v723_v14, %v934_v10  ;;  %v447_v18 = vpop.f32.mrb[15].mxu1 }
 0x1d3   :  { %v751_v19 = vpop.eup %750  ;;  %v511_v20 = vadd.f32 1.0, %v749_v15  ;;  %770 = vpow2.f32 %v492_v8  ;;  %v496_v21 = vmul.f32 1.442695, %v468_v13  ;;  %v448_v22 = vadd.f32 %v447_v18, %v934_v10 }
 0x1d4   :  { %v753_v23 = vpop.eup %752  ;;  %772 = vpow2.f32 %v498_v16  ;;  %v471_v24 = vsub.f32 0.0, %v453_v17 }
 0x1d5   :  { %v755_v25 = vpop.eup %754  ;;  %537 = vst.msk [vmem:[#allocation3] sm:$0xff] %vm536_vm2, %v753_v23  ;;  %774 = vrcp.f32 %v511_v20  ;;  %v470_v26 = vsub.f32 0.0, %v448_v22 }
 0x1d6   :  { %v757_v27 = vpop.eup %756  ;;  %v510_v28 = vadd.f32 1.0, %v755_v25  ;;  %776 = vpow2.f32 %v496_v21  ;;  %v502_v29 = vmul.f32 1.442695, %v471_v24 }
 0x1d7   :  { %v759_v30 = vpop.eup %758  ;;  %v513_v31 = vadd.f32 1.0, %v757_v27  ;;  %v500_v32 = vmul.f32 1.442695, %v470_v26 }
 0x1d8   :  { %v761_v33 = vpop.eup %760  ;;  %778 = vrcp.f32 %v510_v28 }
 0x1d9   :  { %v763_v34 = vpop.eup %762  ;;  %780 = vrcp.f32 %v513_v31 }
 0x1da   :  { %v765_v10 = vpop.eup %764  ;;  %v512_v35 = vadd.f32 1.0, %v763_v34  ;;  %782 = vpow2.f32 %v502_v29 }
 0x1db   :  { %v767_v36 = vpop.eup %766  ;;  %v515_v37 = vadd.f32 1.0, %v765_v10  ;;  %784 = vpow2.f32 %v500_v32 }
 0x1dc   :  { %v769_v38 = vpop.eup %768  ;;  %v582_v39 = vld [vmem:[#allocation3] sm:$0xff]  ;;  %786 = vrcp.f32 %v512_v35 }
 0x1dd   :  { %v771_v40 = vpop.eup %770  ;;  %583 = vst [vmem:[%s961_s5] sm:$0xff] %v582_v39  ;;  %788 = vrcp.f32 %v515_v37 }
 0x1de   :  { %v773_v41 = vpop.eup %772  ;;  %v514_v42 = vadd.f32 1.0, %v771_v40 }
 0x1df   :  { %v775_v43 = vpop.eup %774  ;;  %v517_v44 = vadd.f32 1.0, %v773_v41 }
 0x1e0   :  { %v777_v45 = vpop.eup %776  ;;  %790 = vrcp.f32 %v514_v42 }
 0x1e1   :  { %792 = vrcp.f32 %v517_v44  ;;  %v516_v46 = vadd.f32 1.0, %v777_v45 }
 0x1e2   :  { %v779_v47 = vpop.eup %778 }
 0x1e3   :  { %v781_v48 = vpop.eup %780  ;;  %794 = vrcp.f32 %v516_v46 }
 0x1e4   :  { %v783_v49 = vpop.eup %782 }
 0x1e5   :  { %v785_v50 = vpop.eup %784  ;;  %v519_v51 = vadd.f32 1.0, %v783_v49 }
 0x1e6   :  { %v787_v52 = vpop.eup %786  ;;  %v518_v53 = vadd.f32 1.0, %v785_v50 }
 0x1e7   :  { %v789_v54 = vpop.eup %788  ;;  %796 = vrcp.f32 %v519_v51 }
 0x1e8   :  { %798 = vrcp.f32 %v518_v53 }
 0x1ea   :  { %v791_v55 = vpop.eup %790 }
 0x1eb   :  { %v793_v56 = vpop.eup %792 }
 0x1ed   :  { %v795_v57 = vpop.eup %794 }
 0x1f1   :  { %v797_v58 = vpop.eup %796 }
 0x1f2   :  { %v799_v59 = vpop.eup %798 }

</bundles_post_ra>
